<compile_context>
chip_gen: v7x
topology: tpu7x:2x2x1
jax: 0.10.0
libtpu: 0.0.40
codegen_flags: <defaults>
</compile_context>

<pallas_src>
import functools

import jax
import jax.numpy as jnp
from jax.experimental import pallas as pl
from jax.experimental.pallas import tpu as pltpu

BN_EPS = 1e-5
LANE = 128


# ----------------------------- helpers ---------------------------------------


def _round_up(n, m):
    return m * pl.cdiv(n, m)


def _pad_last(a, target, value=0.0):
    n = a.shape[-1]
    if n == target:
        return a
    pad = [(0, 0)] * (a.ndim - 1) + [(0, target - n)]
    return jnp.pad(a, pad, constant_values=value)


def _bytes(a):
    return a.size * jnp.dtype(a.dtype).itemsize


def _vmem_limit(in_arrays, out_bytes):
    """Explicit VMEM budget: double-buffered blocks + headroom, clamped so it
    stays inside v7x's 64 MiB physical VMEM."""
    total = sum(_bytes(a) for a in in_arrays) + out_bytes
    return int(min(max(4 * total, 16 << 20), 48 << 20))


# ----------------------------- shared math -----------------------------------


def _bn_train(y, gamma, beta, *, eps, inv_b):
    """BatchNorm1d training mode, single-pass stats + folded affine.

    mean = s1/B ; var = s2/B - mean^2 (biased, matches PyTorch normalization);
    scale = gamma * rsqrt(var+eps) ; shift = beta - mean*scale ; y*scale+shift.
    """
    s1 = jnp.sum(y, axis=0, keepdims=True)
    s2 = jnp.sum(y * y, axis=0, keepdims=True)
    mean = s1 * inv_b
    var = s2 * inv_b - mean * mean
    scale = gamma * jax.lax.rsqrt(var + eps)
    shift = beta - mean * scale
    return y * scale + shift


# ----------------------------- kernels ---------------------------------------


def _linear_kernel(x_ref, w_ref, o_ref):
    # x_ref: (B, K) f32 — cast to bf16 in-kernel, MXU accumulates in f32.
    x = x_ref[...].astype(w_ref.dtype)
    y = jnp.dot(x, w_ref[...], preferred_element_type=jnp.float32)
    o_ref[...] = y.astype(o_ref.dtype)


def _linear_bias_kernel(x_ref, w_ref, b_ref, o_ref):
    x = x_ref[...].astype(w_ref.dtype)
    y = jnp.dot(x, w_ref[...], preferred_element_type=jnp.float32)
    o_ref[...] = (y + b_ref[...]).astype(o_ref.dtype)


def _linear_bn_kernel(x_ref, w_ref, g_ref, b_ref, o_ref, *, eps, inv_b):
    # Linear (no bias — PyTorch drops it when use_bn=True) fused with BN.
    # BN stats need the full batch: B is never tiled on this path.
    x = x_ref[...].astype(w_ref.dtype)
    y = jnp.dot(x, w_ref[...], preferred_element_type=jnp.float32)
    o_ref[...] = _bn_train(y, g_ref[...], b_ref[...],
                           eps=eps, inv_b=inv_b).astype(o_ref.dtype)


def _projection_head_kernel(x_ref, w1_ref, g1_ref, b1_ref,
                            w2_ref, g2_ref, b2_ref, o_ref, *, eps, inv_b):
    # Fused ProjectionHead('nonlinear'):
    #   LinearLayer(in->hid, BN) -> ReLU -> LinearLayer(hid->out, no bias, BN)
    x = x_ref[...].astype(w1_ref.dtype)
    h = jnp.dot(x, w1_ref[...], preferred_element_type=jnp.float32)
    h = _bn_train(h, g1_ref[...], b1_ref[...], eps=eps, inv_b=inv_b)
    h = jnp.maximum(h, 0.0)
    y = jnp.dot(h.astype(w2_ref.dtype), w2_ref[...],
                preferred_element_type=jnp.float32)
    o_ref[...] = _bn_train(y, g2_ref[...], b2_ref[...],
                           eps=eps, inv_b=inv_b).astype(o_ref.dtype)


# ----------------------------- one-time param prep ----------------------------


def prepare_linear_params(weight, bias=None, gamma=None, beta=None, *,
                          use_bias=True, use_bn=False,
                          compute_dtype=jnp.bfloat16):
    """One-time, init-side prep of LinearLayer params.

    weight: (out_channels, in_channels) — PyTorch nn.Linear layout.
    Returns padded/cast device arrays; call once, reuse every step.
    """
    N, K = weight.shape
    n_pad = _round_up(N, LANE)
    w = _pad_last(jnp.asarray(weight, jnp.float32).T.astype(compute_dtype), n_pad)
    p = dict(w=w, k=K, n=N, n_pad=n_pad, use_bias=use_bias, use_bn=use_bn)
    if use_bn:
        # Pad gamma with 1.0 / beta with 0.0 — required invariant (see header).
        p["g"] = _pad_last(jnp.asarray(gamma, jnp.float32).reshape(1, N), n_pad, 1.0)
        p["b"] = _pad_last(jnp.asarray(beta, jnp.float32).reshape(1, N), n_pad, 0.0)
    elif use_bias:
        p["b"] = _pad_last(jnp.asarray(bias, jnp.float32).reshape(1, N), n_pad, 0.0)
    return p


def prepare_projection_head_params(w1, gamma1, beta1, w2, gamma2, beta2, *,
                                   compute_dtype=jnp.bfloat16):
    """One-time prep of the fused ProjectionHead('nonlinear') params.

    w1: (hidden, in) ; w2: (out, hidden) — PyTorch layouts.
    """
    H, K = w1.shape
    O, H2 = w2.shape
    assert H == H2
    h_pad = _round_up(H, LANE)
    o_pad = _round_up(O, LANE)
    w1p = _pad_last(jnp.asarray(w1, jnp.float32).T.astype(compute_dtype), h_pad)
    g1 = _pad_last(jnp.asarray(gamma1, jnp.float32).reshape(1, H), h_pad, 1.0)
    b1 = _pad_last(jnp.asarray(beta1, jnp.float32).reshape(1, H), h_pad, 0.0)
    w2p = jnp.pad(jnp.asarray(w2, jnp.float32).T.astype(compute_dtype),
                  ((0, h_pad - H), (0, o_pad - O)))
    g2 = _pad_last(jnp.asarray(gamma2, jnp.float32).reshape(1, O), o_pad, 1.0)
    b2 = _pad_last(jnp.asarray(beta2, jnp.float32).reshape(1, O), o_pad, 0.0)
    return dict(w1=w1p, g1=g1, b1=b1, w2=w2p, g2=g2, b2=b2,
                k=K, h=H, o=O, h_pad=h_pad, o_pad=o_pad)


# ----------------------------- wrappers ---------------------------------------


def linear_layer(x, params, *, tile_n=None, return_padded=False):
    """LinearLayer.forward as a Pallas kernel.

    x: (B, in_channels) f32 (cast to bf16 inside the kernel).
    params: output of prepare_linear_params (padded bf16 weight, f32 BN/bias).
    tile_n: N tile; default = padded N (single grid step — right call on the
            single-TC v5e/v6e). On v7x at production N pass n_pad//2 (keep it
            a multiple of 256) so two parallel steps shard across the 2 TCs.
    """
    B, K = x.shape
    assert K == params["k"]
    N, n_pad = params["n"], params["n_pad"]
    if tile_n is None:
        tile_n = n_pad
    assert tile_n % LANE == 0 and n_pad % tile_n == 0
    grid = (n_pad // tile_n,)
    # BN needs full-batch statistics in one block: B is never tiled here.

    w = params["w"]
    x_spec = pl.BlockSpec((B, K), lambda j: (0, 0))
    w_spec = pl.BlockSpec((K, tile_n), lambda j: (0, j))
    vec_spec = pl.BlockSpec((1, tile_n), lambda j: (0, j))
    out_spec = pl.BlockSpec((B, tile_n), lambda j: (0, j))
    out_shape = jax.ShapeDtypeStruct((B, n_pad), x.dtype)
    out_bytes = B * n_pad * jnp.dtype(x.dtype).itemsize

    use_bn, use_bias = params["use_bn"], params["use_bias"]
    extra = [params["g"], params["b"]] if use_bn else (
        [params["b"]] if use_bias else [])
    cost = pl.CostEstimate(
        flops=2 * B * K * n_pad,
        transcendentals=n_pad if use_bn else 0,
        bytes_accessed=_bytes(x) + _bytes(w) + sum(_bytes(a) for a in extra)
        + out_bytes)
    cparams = pltpu.CompilerParams(
        dimension_semantics=("parallel",),
        vmem_limit_bytes=_vmem_limit([x, w] + extra, out_bytes))

    if use_bn:
        y = pl.pallas_call(
            functools.partial(_linear_bn_kernel, eps=BN_EPS, inv_b=1.0 / B),
            out_shape=out_shape,
            grid_spec=pltpu.PrefetchScalarGridSpec(
                num_scalar_prefetch=0, grid=grid,
                in_specs=[x_spec, w_spec, vec_spec, vec_spec],
                out_specs=out_spec),
            compiler_params=cparams, cost_estimate=cost,
        )(x, w, params["g"], params["b"])
    elif use_bias:
        y = pl.pallas_call(
            _linear_bias_kernel,
            out_shape=out_shape,
            grid_spec=pltpu.PrefetchScalarGridSpec(
                num_scalar_prefetch=0, grid=grid,
                in_specs=[x_spec, w_spec, vec_spec],
                out_specs=out_spec),
            compiler_params=cparams, cost_estimate=cost,
        )(x, w, params["b"])
    else:
        # True no-bias path: no dummy zero vector, one fewer input DMA.
        y = pl.pallas_call(
            _linear_kernel,
            out_shape=out_shape,
            grid_spec=pltpu.PrefetchScalarGridSpec(
                num_scalar_prefetch=0, grid=grid,
                in_specs=[x_spec, w_spec],
                out_specs=out_spec),
            compiler_params=cparams, cost_estimate=cost,
        )(x, w)

    if return_padded or n_pad == N:
        return y
    return y[:, :N]


def projection_head_nonlinear(x, params, *, return_padded=False):
    """Fused ProjectionHead('nonlinear') of custom_Regression_model.

    x: (B, in_features) f32 resnet features; params from
    prepare_projection_head_params. Entire head runs in ONE pallas_call /
    one grid step (whole problem fits VMEM with huge margin).
    TODO(synk): for SimCLR-scale B on v7x (64 MiB VMEM), switch to a two-pass
    BN (stats pass over B tiles, then normalize) instead of one grid step.
    """
    B, K = x.shape
    assert K == params["k"]
    h_pad, o_pad, O = params["h_pad"], params["o_pad"], params["o"]
    w1, g1, b1 = params["w1"], params["g1"], params["b1"]
    w2, g2, b2 = params["w2"], params["g2"], params["b2"]

    out_shape = jax.ShapeDtypeStruct((B, o_pad), x.dtype)
    out_bytes = B * o_pad * jnp.dtype(x.dtype).itemsize
    ins = [x, w1, g1, b1, w2, g2, b2]
    cost = pl.CostEstimate(
        flops=2 * B * K * h_pad + 2 * B * h_pad * o_pad,
        transcendentals=h_pad + o_pad,           # rsqrt per BN feature
        bytes_accessed=sum(_bytes(a) for a in ins) + out_bytes)

    y = pl.pallas_call(
        functools.partial(_projection_head_kernel, eps=BN_EPS, inv_b=1.0 / B),
        out_shape=out_shape,
        grid_spec=pltpu.PrefetchScalarGridSpec(
            num_scalar_prefetch=0, grid=(1,),
            in_specs=[
                pl.BlockSpec((B, K), lambda i: (0, 0)),
                pl.BlockSpec((K, h_pad), lambda i: (0, 0)),
                pl.BlockSpec((1, h_pad), lambda i: (0, 0)),
                pl.BlockSpec((1, h_pad), lambda i: (0, 0)),
                pl.BlockSpec((h_pad, o_pad), lambda i: (0, 0)),
                pl.BlockSpec((1, o_pad), lambda i: (0, 0)),
                pl.BlockSpec((1, o_pad), lambda i: (0, 0)),
            ],
            out_specs=pl.BlockSpec((B, o_pad), lambda i: (0, 0))),
        compiler_params=pltpu.CompilerParams(
            dimension_semantics=("arbitrary",),
            vmem_limit_bytes=_vmem_limit(ins, out_bytes)),
        cost_estimate=cost,
    )(x, w1, g1, b1, w2, g2, b2)

    if return_padded or o_pad == O:
        return y
    return y[:, :O]


# ----------------------------- references -------------------------------------
# Pure-JAX references matching PyTorch semantics (Linear + BatchNorm1d train
# mode, biased var, eps=1e-5) with the same bf16-matmul / f32-accumulate
# numerics as the kernels, but with the straightforward two-pass BN so the
# single-pass in-kernel formulation is validated against it.


def _bn_ref(y, gamma, beta, eps):
    mean = jnp.mean(y, axis=0, keepdims=True)
    var = jnp.mean((y - mean) ** 2, axis=0, keepdims=True)
    return (y - mean) * jax.lax.rsqrt(var + eps) * gamma + beta


def linear_layer_ref(x, weight, bias, gamma, beta, *, use_bias, use_bn,
                     compute_dtype=jnp.bfloat16):
    y = jnp.dot(x.astype(compute_dtype), weight.T.astype(compute_dtype),
                preferred_element_type=jnp.float32)
    if use_bn:
        y = _bn_ref(y, gamma[None, :], beta[None, :], BN_EPS)
    elif use_bias:
        y = y + bias[None, :]
    return y.astype(x.dtype)


def projection_head_ref(x, w1, gamma1, beta1, w2, gamma2, beta2, *,
                        compute_dtype=jnp.bfloat16):
    h = jnp.dot(x.astype(compute_dtype), w1.T.astype(compute_dtype),
                preferred_element_type=jnp.float32)
    h = _bn_ref(h, gamma1[None, :], beta1[None, :], BN_EPS)
    h = jnp.maximum(h, 0.0)
    y = jnp.dot(h.astype(compute_dtype), w2.T.astype(compute_dtype),
                preferred_element_type=jnp.float32)
    y = _bn_ref(y, gamma2[None, :], beta2[None, :], BN_EPS)
    return y.astype(x.dtype)


# ----------------------------- main --------------------------------------------


if __name__ == "__main__":
    # B=8 = 2 SimCLR views x 4 samples, stacked along the batch so the head is
    # called ONCE per step (per review: batch rows instead of per-view calls).
    B = 8
    IN_F, HID_F, OUT_F = 128, 64, 2     # custom_resnet projector dims 128->64->2

    key = jax.random.PRNGKey(0)
    kx, kw1, kb1, kw2, kg1, kb1n, kg2, kb2n = jax.random.split(key, 8)

    # Stand-in for ResNet backbone features (see TODO at top of file).
    feats = jax.random.normal(kx, (B, IN_F), dtype=jnp.float32)

    bound1 = 1.0 / (IN_F ** 0.5)
    w1 = jax.random.uniform(kw1, (HID_F, IN_F), jnp.float32, -bound1, bound1)
    bias1 = jax.random.uniform(kb1, (HID_F,), jnp.float32, -bound1, bound1)
    gamma1 = 1.0 + 0.1 * jax.random.normal(kg1, (HID_F,), jnp.float32)
    beta1 = 0.1 * jax.random.normal(kb1n, (HID_F,), jnp.float32)

    bound2 = 1.0 / (HID_F ** 0.5)
    w2 = jax.random.uniform(kw2, (OUT_F, HID_F), jnp.float32, -bound2, bound2)
    gamma2 = 1.0 + 0.1 * jax.random.normal(kg2, (OUT_F,), jnp.float32)
    beta2 = 0.1 * jax.random.normal(kb2n, (OUT_F,), jnp.float32)

    TOL = dict(atol=1e-2, rtol=1e-2)

    # One-time parameter prep (hoisted out of the per-call path).
    p_bias = prepare_linear_params(w1, bias=bias1, use_bias=True, use_bn=False)
    p_bn = prepare_linear_params(w1, gamma=gamma1, beta=beta1,
                                 use_bias=True, use_bn=True)
    p_nobias = prepare_linear_params(w1, use_bias=False, use_bn=False)
    p_head = prepare_projection_head_params(w1, gamma1, beta1, w2, gamma2, beta2)

    # --- LinearLayer kernel: bias path (use_bias=True, use_bn=False) ----------
    y = linear_layer(feats, p_bias)
    jax.block_until_ready(y)
    r = linear_layer_ref(feats, w1, bias1, gamma1, beta1,
                         use_bias=True, use_bn=False)
    assert y.shape == (B, HID_F)
    assert jnp.allclose(y, r, **TOL)

    # --- LinearLayer kernel: BN path (the projector's LinearLayer) ------------
    y = linear_layer(feats, p_bn)
    jax.block_until_ready(y)
    r = linear_layer_ref(feats, w1, bias1, gamma1, beta1,
                         use_bias=True, use_bn=True)
    assert y.shape == (B, HID_F)
    assert jnp.allclose(y, r, **TOL)

    # --- LinearLayer kernel: true no-bias, no-BN path --------------------------
    y = linear_layer(feats, p_nobias)
    jax.block_until_ready(y)
    r = linear_layer_ref(feats, w1, bias1, gamma1, beta1,
                         use_bias=False, use_bn=False)
    assert y.shape == (B, HID_F)
    assert jnp.allclose(y, r, **TOL)

    # --- Fused ProjectionHead('nonlinear') of custom_Regression_model ---------
    out = projection_head_nonlinear(feats, p_head)
    jax.block_until_ready(out)
    r = projection_head_ref(feats, w1, gamma1, beta1, w2, gamma2, beta2)
    assert out.shape == (B, OUT_F)
    assert jnp.allclose(out, r, **TOL)

    # Padded (lane-dense) output path: same values in the first OUT_F columns.
    out_pad = projection_head_nonlinear(feats, p_head, return_padded=True)
    jax.block_until_ready(out_pad)
    assert out_pad.shape == (B, _round_up(OUT_F, LANE))
    assert jnp.allclose(out_pad[:, :OUT_F], r, **TOL)

    print("KERNEL_OK")
</pallas_src>

<mosaic_0001>
module attributes {stable_mosaic.version = 11 : i64} {
  func.func @_linear_bias_kernel(%arg0: i32, %arg1: memref<8x128xf32, #tpu.memory_space<vmem>>, %arg2: memref<128x128xbf16, #tpu.memory_space<vmem>>, %arg3: memref<1x128xf32, #tpu.memory_space<vmem>>, %arg4: memref<8x128xf32, #tpu.memory_space<vmem>>) attributes {dimension_semantics = [#tpu.dimension_semantics<parallel>], iteration_bounds = array<i64: 1>, scalar_prefetch = 0 : i64, scratch_operands = 0 : i64, tpu.core_type = #tpu.core_type<tc>, window_params = [{pipeline_mode = #tpu.pipeline_mode<synchronous>, transform_indices = @transform_0, window_bounds = array<i64: 8, 128>}, {transform_indices = @transform_1, window_bounds = array<i64: 128, 128>}, {transform_indices = @transform_2, window_bounds = array<i64: 1, 128>}, {transform_indices = @transform_3, window_bounds = array<i64: 8, 128>}]} {
    %c0 = arith.constant 0 : index
    %c0_0 = arith.constant 0 : index
    %0 = vector.load %arg1[%c0, %c0_0] : memref<8x128xf32, #tpu.memory_space<vmem>>, vector<8x128xf32>
    %1 = arith.truncf %0 : vector<8x128xf32> to vector<8x128xbf16>
    %c0_1 = arith.constant 0 : index
    %c0_2 = arith.constant 0 : index
    %2 = vector.load %arg2[%c0_1, %c0_2] : memref<128x128xbf16, #tpu.memory_space<vmem>>, vector<128x128xbf16>
    %cst = arith.constant dense<0.000000e+00> : vector<8x128xf32>
    %3 = tpu.matmul %1, %2, %cst {dimension_numbers = #tpu.dot_dimension_numbers<[1], [0], [0], [1], [0, 0, 1, 1], [], []>} : vector<8x128xbf16>, vector<128x128xbf16>, vector<8x128xf32> -> vector<8x128xf32>
    %c0_3 = arith.constant 0 : index
    %c0_4 = arith.constant 0 : index
    %4 = vector.load %arg3[%c0_3, %c0_4] : memref<1x128xf32, #tpu.memory_space<vmem>>, vector<1x128xf32>
    %5 = vector.broadcast %4 : vector<1x128xf32> to vector<8x128xf32>
    %6 = arith.addf %3, %5 : vector<8x128xf32>
    %c0_5 = arith.constant 0 : index
    %c0_6 = arith.constant 0 : index
    %7 = vector.load %arg4[%c0_5, %c0_6] : memref<8x128xf32, #tpu.memory_space<vmem>>, vector<8x128xf32>
    tpu.vector_store %arg4[%c0_5, %c0_6], %6 {strides = array<i32>} : memref<8x128xf32, #tpu.memory_space<vmem>>, vector<8x128xf32>,
    return
  }
  func.func @transform_0(%arg0: i32) -> (i32, i32) {
    %c0_i32 = arith.constant 0 : i32
    %c0_i32_0 = arith.constant 0 : i32
    %c0_i32_1 = arith.constant 0 : i32
    return %c0_i32, %c0_i32_0 : i32, i32
  }
  func.func @transform_1(%arg0: i32) -> (i32, i32) {
    %c0_i32 = arith.constant 0 : i32
    %c0_i32_0 = arith.constant 0 : i32
    return %c0_i32, %arg0 : i32, i32
  }
  func.func @transform_2(%arg0: i32) -> (i32, i32) {
    %c0_i32 = arith.constant 0 : i32
    %c0_i32_0 = arith.constant 0 : i32
    return %c0_i32, %arg0 : i32, i32
  }
  func.func @transform_3(%arg0: i32) -> (i32, i32) {
    %c0_i32 = arith.constant 0 : i32
    %c0_i32_0 = arith.constant 0 : i32
    return %c0_i32, %arg0 : i32, i32
  }
}

</mosaic_0001>

<bundles_post_ra>
// kernel: tpu_custom_call.1
= control target key start
LH: loop header
LB: loop body
LE: loop exit
PB: predicated region body
PF: predicated region fallthrough
CT: control target
= control target key end

     0   :  { %8 = vsyncpa [#allocation3], 0  ;;  %s370_s0 = inlined_call_operand.hbm [shape: f32[8,128], index: 0, kind: input, shape index: {}]   ;;  %s371_s1 = inlined_call_operand.hbm [shape: bf16[128,128], index: 1, kind: input, shape index: {}]   ;;  %s372_s2 = inlined_call_operand.vmem [shape: f32[1,128], index: 2, kind: input, shape index: {}]   ;;  %s373_s3 = inlined_call_operand.hbm [shape: f32[8,128], index: 3, kind: output, shape index: {}]  }
   0x1   :  { %9 = vsyncpa [#allocation6], 0 }
   0x2   :  { %10 = vsyncpa [#allocation4], 0  ;;  %s297_s12 = smov [#allocation2]   ;;  %s298_s14 = smov [#allocation5]  }
   0x3   :  { %s17_s13 = sshll.u32 %s297_s12, 4  ;;  %s26_s15 = sshll.u32 %s298_s14, 4  ;;  %s18_s13 = int_to_ptr.vmem [resolvable:$true] %s17_s13  ;;  %s324_s15 = int_to_ptr.vmem [resolvable:$true] %s26_s15 }
   0x4   :  { %s225_s18 = scalar_lea.hbm %s370_s0, 128 }
   0x5   :  { %p226_p0 = scmp.ne.s32.totalorder %s370_s0, %s225_s18  ;;  %p229_p1 = scmp.lt.u32.totalorder %s225_s18, %s370_s0 }
   0x7   :  { %p231_p2 = pnand %p229_p1, %p226_p0 }
   0x9   :  { %234 = shalt.err (!%p231_p2)
}
   0xa   :  { %s235_s23 = scalar_lea.vmem %s18_s13, 128  ;;  %p240_p4 = scmp.lt.s32.totalorder %s18_s13, %s18_s13 }
   0xb   :  { %p236_p3 = scmp.ne.s32.totalorder %s18_s13, %s235_s23  ;;  %p241_p5 = scmp.lt.s32.totalorder %s235_s23, %s235_s23 }
   0xd   :  { %p242_p6 = por %p241_p5, %p240_p4 }
   0xf   :  { %p243_p7 = pnand %p242_p6, %p236_p3 }
  0x11   :  { %246 = shalt.err (!%p243_p7)
}
  0x12   :  { %20 = dma.hbm_to_vmem [thread:$0]  %s370_s0, 128, %s18_s13, [#allocation3]  }
  0x13   :  { %s247_s28 = scalar_lea.hbm %s371_s1, 1024 }
  0x14   :  { %p248_p8 = scmp.ne.s32.totalorder %s371_s1, %s247_s28  ;;  %p251_p9 = scmp.lt.u32.totalorder %s247_s28, %s371_s1 }
  0x16   :  { %p253_p10 = pnand %p251_p9, %p248_p8 }
  0x18   :  { %256 = shalt.err (!%p253_p10)
}
  0x19   :  { %s257_s6 = scalar_lea.vmem %s324_s15, 1024  ;;  %p262_p12 = scmp.lt.s32.totalorder %s324_s15, %s324_s15 }
  0x1a   :  { %p258_p11 = scmp.ne.s32.totalorder %s324_s15, %s257_s6  ;;  %p263_p13 = scmp.lt.s32.totalorder %s257_s6, %s257_s6 }
  0x1c   :  { %p264_p0 = por %p263_p13, %p262_p12 }
  0x1e   :  { %p265_p1 = pnand %p264_p0, %p258_p11 }
  0x20   :  { %268 = shalt.err (!%p265_p1)
}
  0x21   :  { %s299_s0 = smov 64   ;;  %s300_s7 = smov 4  }
  0x22   :  { %32 = dma.hbm_to_vmem [thread:$0]  %s371_s1, 1024, %s324_s15, [#allocation6], %s299_s0, %s299_s0, %s300_s7  }
  0x23   :  { %291 = dma.done.wait [#allocation3], 128  }
  0x24   :  { %292 = vsyncadd [#allocation3], 4294967168 }
  0x25   :  { %293 = dma.done.wait [#allocation6], 1024  }
  0x26   :  { %294 = vsyncadd [#allocation6], 4294966272  ;;  %v301_v0 = vmov 0.0   ;;  %vm302_vm0 = vmmov 0   ;;  %v217_v1 = vld [vmem:[#allocation5] sm:$0xff]   ;;  %v218_v2 = vld [vmem:[#allocation5 + $0x8] sm:$0xff]  }
  0x27   :  { %190 = vmatprep.subr.bf16.mxu0 %v301_v0  ;;  %206 = vmatprep.mubr.msk.bf16.mxu0 %vm302_vm0, %v301_v0  ;;  %v219_v3 = vld [vmem:[#allocation5 + $0x10] sm:$0xff]   ;;  %v220_v4 = vld [vmem:[#allocation5 + $0x18] sm:$0xff]   ;;  %v221_v5 = vld [vmem:[#allocation5 + $0x20] sm:$0xff]   ;;  %s303_s11 = smov [#allocation7]  }
  0x28   :  { %191 = vmatpush3.bf16.msra.mxu0 %v217_v1  ;;  %v222_v6 = vld [vmem:[#allocation5 + $0x28] sm:$0xff]   ;;  %v223_v7 = vld [vmem:[#allocation5 + $0x30] sm:$0xff]   ;;  %v224_v8 = vld [vmem:[#allocation5 + $0x38] sm:$0xff]   ;;  %s162_s12 = sshll.u32 %s303_s11, 4  ;;  %s163_s12 = int_to_ptr.vmem [resolvable:$true] %s162_s12 }
  0x29   :  { %192 = vmatprep.subr.bf16.mxu0 %v301_v0  ;;  %v42_v9 = vld [vmem:[#allocation2] sm:$0xff]  ;;  %s269_s13 = scalar_lea.vmem %s163_s12, 128  ;;  %p274_p3 = scmp.lt.s32.totalorder %s163_s12, %s163_s12 }
  0x2a   :  { %v43_v10 = vpack.c.bf16 %v42_v9, %v42_v9  ;;  %v172_v11 = vld [vmem:[%s372_s2] ss:$0 sm:$0xff]  ;;  %p270_p2 = scmp.ne.s32.totalorder %s163_s12, %s269_s13  ;;  %p275_p4 = scmp.lt.s32.totalorder %s269_s13, %s269_s13 }
  0x2c   :  { %193 = vmatpush3.bf16.msra.mxu0 %v218_v2  ;;  %p276_p5 = por %p275_p4, %p274_p3 }
  0x2d   :  { %194 = vmatprep.subr.bf16.mxu0 %v301_v0 }
  0x2e   :  { %p277_p6 = pnand %p276_p5, %p270_p2 }
  0x30   :  { %195 = vmatpush3.bf16.msra.mxu0 %v219_v3 }
  0x31   :  { %196 = vmatprep.subr.bf16.mxu0 %v301_v0 }
  0x34   :  { %197 = vmatpush3.bf16.msra.mxu0 %v220_v4 }
  0x35   :  { %198 = vmatprep.subr.bf16.mxu0 %v301_v0 }
  0x38   :  { %199 = vmatpush3.bf16.msra.mxu0 %v221_v5 }
  0x39   :  { %200 = vmatprep.subr.bf16.mxu0 %v301_v0 }
  0x3c   :  { %201 = vmatpush3.bf16.msra.mxu0 %v222_v6 }
  0x3d   :  { %202 = vmatprep.subr.bf16.mxu0 %v301_v0 }
  0x40   :  { %203 = vmatpush3.bf16.msra.mxu0 %v223_v7 }
  0x41   :  { %204 = vmatprep.subr.bf16.mxu0 %v301_v0 }
  0x44   :  { %205 = vmatpush3.bf16.msra.mxu0 %v224_v8 }
  0x47   :  { %207 = vmatmul.mubr.bf16.vlgmr.msra.gmra.mrb[0].mxu0 %v43_v10 }
 0x11a   :  { %v149_v12 = vpop.f32.mrb[0].mxu0 }
 0x11b   :  { %v150_v13 = vadd.f32 %v172_v11, %v149_v12  ;;  %v208_v14 = vpop.f32.mrb[1].mxu0 }
 0x11c   :  { %v152_v15 = vpop.f32.mrb[2].mxu0 }
 0x11d   :  { %155 = vst [vmem:[#allocation7] sm:$0xff] %v150_v13  ;;  %v209_v16 = vpop.f32.mrb[3].mxu0 }
 0x11e   :  { %280 = shalt.err (!%p277_p6)
}
 0x11f   :  { %s281_s2 = scalar_lea.hbm %s373_s3, 128 }
 0x120   :  { %p282_p7 = scmp.ne.s32.totalorder %s373_s3, %s281_s2  ;;  %p285_p8 = scmp.lt.u32.totalorder %s281_s2, %s373_s3 }
 0x122   :  { %p287_p9 = pnand %p285_p8, %p282_p7 }
 0x124   :  { %290 = shalt.err (!%p287_p9)
}
 0x125   :  { %165 = dma.vmem_to_hbm [thread:$0]  %s163_s12, 128, %s373_s3, [#allocation4]  }
 0x126   :  { %295 = dma.done.wait [#allocation4], 128  }
 0x127   :  { %296 = vsyncadd [#allocation4], 4294967168 }
 0x128   :  { %169 = vsyncpa [#allocation3], 1 }
 0x129   :  { %170 = vsyncpa [#allocation6], 1 }
 0x12a   :  { %171 = vsyncpa [#allocation4], 1 }

</bundles_post_ra>
